<compile_context>
chip_gen: v7x
topology: tpu7x:2x2x1
jax: 0.10.0
libtpu: 0.0.40
codegen_flags: <defaults>
</compile_context>

<pallas_src>
import functools

import jax
import jax.numpy as jnp
from jax import lax
from jax.experimental import pallas as pl
from jax.experimental.pallas import tpu as pltpu

BN_EPS = 1e-5                      # torch.nn.BatchNorm1d default
_VMEM_LIMIT = 48 * 1024 * 1024     # <= v7x 64 MiB physical; raises v5e 16 MiB scoped default


# --------------------------------------------------------------------------------------
# kernels
# --------------------------------------------------------------------------------------
def _conv_one(xp_ref, wt_ref, b):
    """Fused-branch conv for one batch element, NCL layout, single packed contraction.

    xp_ref: (B_TILE, Cin, Lp)    shared-padded input tile (Lp = L + Kmax - 1)
    wt_ref: (Ctot_p, Kmax*Cin)   fused transposed weight slab (branches concatenated on Ctot)
    returns (Ctot_p, L) f32 conv output WITHOUT the conv bias (added by callers as needed).
    """
    cin = xp_ref.shape[1]
    lp = xp_ref.shape[2]
    kc = wt_ref.shape[1]
    kmax = kc // cin
    l = lp - kmax + 1

    xb = xp_ref[b]                                                   # (Cin, Lp)
    # im2col: row (t*Cin + ci) holds x[ci, t : t+L]; Kmax static & small -> unrolled slices.
    cols = jnp.concatenate([xb[:, t:t + l] for t in range(kmax)], axis=0)   # (KC, L)
    # One MXU matmul: M = Ctot_p (sublanes), K = Kmax*Cin, N = L (lanes).
    return jnp.dot(wt_ref[...], cols, preferred_element_type=jnp.float32)   # (Ctot_p, L)


def _stats_kernel(xp_ref, wt_ref, psum_ref, *, total_steps, steps):
    """Accumulate per-channel [sum, sum_sq] of the bias-free conv output.

    Grid = (n_shards "parallel", steps "arbitrary"); psum_ref block (1, Ctot_p, 2) is
    resident per shard across the reduction axis.
    """
    s = pl.program_id(0)
    i = pl.program_id(1)

    @pl.when(i == 0)
    def _():
        psum_ref[...] = jnp.zeros_like(psum_ref)

    @pl.when(s * steps + i < total_steps)          # guard the clamped ragged tail step
    def _():
        b_tile = xp_ref.shape[0]
        ctot_p = wt_ref.shape[0]
        ssum = jnp.zeros((ctot_p, 1), jnp.float32)
        ssq = jnp.zeros((ctot_p, 1), jnp.float32)
        for b in range(b_tile):
            y = _conv_one(xp_ref, wt_ref, b)                          # (Ctot_p, L) f32
            ssum = ssum + jnp.sum(y, axis=1, keepdims=True)
            ssq = ssq + jnp.sum(y * y, axis=1, keepdims=True)
        psum_ref[0, :, :] = psum_ref[0, :, :] + jnp.concatenate([ssum, ssq], axis=1)


def _apply_kernel(xp_ref, wt_ref, bias_ref, ss_ref, out_ref):
    """conv + bias -> BN affine -> ReLU, written straight into the concatenated NCL output."""
    b_tile, ctot, _ = out_ref.shape
    bias = bias_ref[...]                                              # (Ctot_p, 1) f32
    scale = ss_ref[:, 0:1]                                            # (Ctot_p, 1) f32
    shift = ss_ref[:, 1:2]
    for b in range(b_tile):
        y = _conv_one(xp_ref, wt_ref, b) + bias                       # (Ctot_p, L) f32
        y = jnp.maximum(y * scale + shift, 0.0)
        out_ref[b, :, :] = y[:ctot, :].astype(out_ref.dtype)


# --------------------------------------------------------------------------------------
# wrapper
# --------------------------------------------------------------------------------------
def build_layer_forward(x_ncl, branch_params, b_tile=None):
    """Equivalent of build_layer_with_layer_parameter.forward (training-mode BN).

    x_ncl: (N, Cin, L) -- same layout as the PyTorch module input.
    branch_params: list of (w (K,Cin,Cout), b (1,Cout), gamma (1,Cout), beta (1,Cout), k)
    returns (N, sum(Cout_i), L)
    """
    n_b, cin, seq_l = x_ncl.shape
    dtype = x_ncl.dtype
    in_bytes = jnp.dtype(dtype).itemsize

    ks = [p[4] for p in branch_params]
    couts = [p[0].shape[2] for p in branch_params]
    kmax = max(ks)
    pad_l = (kmax - 1) // 2
    pad_r = kmax // 2
    lp = seq_l + kmax - 1
    ctot = sum(couts)
    ctot_p = -(-ctot // 8) * 8            # sublane (x8) padding only; lanes carry L
    kc = kmax * cin

    # Fused weight slab: branch with kernel k / same-padding (k-1)//2 sits at tap offset
    # (pad_l - (k-1)//2) of the shared Kmax-tap window; zeros elsewhere.  Reshaped+transposed
    # once here so the kernel does a single (Ctot_p, KC) @ (KC, L) contraction.
    w_slab = jnp.zeros((kmax, cin, ctot_p), dtype)
    bias = jnp.zeros((ctot_p,), jnp.float32)
    gamma = jnp.zeros((ctot_p,), jnp.float32)
    beta = jnp.zeros((ctot_p,), jnp.float32)
    off_c = 0
    for (w, b, g, be, k) in branch_params:
        cout = w.shape[2]
        off_t = pad_l - (k - 1) // 2
        w_slab = w_slab.at[off_t:off_t + k, :, off_c:off_c + cout].set(w.astype(dtype))
        bias = bias.at[off_c:off_c + cout].set(b.reshape(-1).astype(jnp.float32))
        gamma = gamma.at[off_c:off_c + cout].set(g.reshape(-1).astype(jnp.float32))
        beta = beta.at[off_c:off_c + cout].set(be.reshape(-1).astype(jnp.float32))
        off_c += cout
    w_t = jnp.transpose(w_slab.reshape(kc, ctot_p))                   # (Ctot_p, KC)

    # Shared padded input, kept in NCL (only input-sized HBM pass; no transposes anywhere).
    xp = jnp.pad(x_ncl, ((0, 0), (0, 0), (pad_l, pad_r)))             # (N, Cin, Lp)

    # Batch tile: largest divisor of N (cap 8) whose double-buffered blocks + f32 temporaries
    # fit a ~12 MiB budget -> safe under v7x's 64 MiB physical / 48 MiB requested VMEM.
    if b_tile is None:
        per_elem = (2 * (cin * lp * in_bytes + ctot * seq_l * in_bytes)
                    + (kc + 2 * ctot_p) * seq_l * 4)
        b_tile = 1
        for cand in range(1, min(n_b, 8) + 1):
            if n_b % cand == 0 and cand * per_elem <= (12 << 20):
                b_tile = cand
    total_steps = n_b // b_tile
    n_shards = 2 if total_steps >= 2 else 1       # v7x: one stats shard per TensorCore
    steps = -(-total_steps // n_shards)

    # ---------------- pass 1: batch statistics (partial sums per shard) ----------------
    x_spec_2d = pl.BlockSpec(
        (b_tile, cin, lp),
        lambda s, i: (jnp.minimum(s * steps + i, total_steps - 1), 0, 0))
    w_spec_2d = pl.BlockSpec((ctot_p, kc), lambda s, i: (0, 0))
    psum_spec = pl.BlockSpec((1, ctot_p, 2), lambda s, i: (s, 0, 0))

    psums = pl.pallas_call(
        functools.partial(_stats_kernel, total_steps=total_steps, steps=steps),
        out_shape=jax.ShapeDtypeStruct((n_shards, ctot_p, 2), jnp.float32),
        grid_spec=pltpu.PrefetchScalarGridSpec(
            num_scalar_prefetch=0,
            grid=(n_shards, steps),
            in_specs=[x_spec_2d, w_spec_2d],
            out_specs=psum_spec,
        ),
        compiler_params=pltpu.CompilerParams(
            dimension_semantics=("parallel", "arbitrary"),
            vmem_limit_bytes=_VMEM_LIMIT),
    )(xp, w_t)

    # Finalize (O(Ctot) work) in f32: biased variance, clamped >= 0; conv bias folded into
    # the mean exactly (stats were accumulated on the bias-free conv output).
    sums = jnp.sum(psums, axis=0)                                     # (Ctot_p, 2)
    inv_count = 1.0 / float(n_b * seq_l)
    mean_nb = sums[:, 0] * inv_count
    var = jnp.maximum(sums[:, 1] * inv_count - mean_nb * mean_nb, 0.0)
    mean = mean_nb + bias
    scale = gamma * lax.rsqrt(var + BN_EPS)
    shift = beta - mean * scale
    scale_shift = jnp.stack([scale, shift], axis=1)                   # (Ctot_p, 2) f32

    # ---------------- pass 2: conv + BN affine + ReLU -> concatenated NCL output -------
    x_spec_1d = pl.BlockSpec((b_tile, cin, lp), lambda n: (n, 0, 0))
    w_spec_1d = pl.BlockSpec((ctot_p, kc), lambda n: (0, 0))
    vec_spec = pl.BlockSpec((ctot_p, 1), lambda n: (0, 0))
    ss_spec = pl.BlockSpec((ctot_p, 2), lambda n: (0, 0))

    out = pl.pallas_call(
        _apply_kernel,
        out_shape=jax.ShapeDtypeStruct((n_b, ctot, seq_l), dtype),
        grid_spec=pltpu.PrefetchScalarGridSpec(
            num_scalar_prefetch=0,
            grid=(total_steps,),
            in_specs=[x_spec_1d, w_spec_1d, vec_spec, ss_spec],
            out_specs=pl.BlockSpec((b_tile, ctot, seq_l), lambda n: (n, 0, 0)),
        ),
        compiler_params=pltpu.CompilerParams(
            dimension_semantics=("parallel",),
            vmem_limit_bytes=_VMEM_LIMIT),
    )(xp, w_t, bias.reshape(ctot_p, 1), scale_shift)

    return out                                                        # (N, Ctot, L), NCL


# ---------------- pure-JAX reference (for a correctness check) ----------------
def _reference_forward(x_ncl, branch_params):
    outs = []
    for (w, b, gamma, beta, k) in branch_params:
        pad_l = (k - 1) // 2
        pad_r = k // 2
        w_oik = jnp.transpose(w, (2, 1, 0))                           # (Cout, Cin, K)
        y = lax.conv_general_dilated(
            x_ncl.astype(jnp.float32), w_oik.astype(jnp.float32),
            window_strides=(1,), padding=[(pad_l, pad_r)],
            dimension_numbers=("NCH", "OIH", "NCH"))
        y = y + b.reshape(1, -1, 1)
        mu = jnp.mean(y, axis=(0, 2), keepdims=True)
        var = jnp.mean((y - mu) ** 2, axis=(0, 2), keepdims=True)
        y = (y - mu) / jnp.sqrt(var + BN_EPS)
        y = y * gamma.reshape(1, -1, 1) + beta.reshape(1, -1, 1)
        outs.append(y)
    return jnp.maximum(jnp.concatenate(outs, axis=1), 0.0)


if __name__ == "__main__":
    # layer_parameters like the OS-CNN builder: [(in_ch, out_ch, kernel_size), ...]
    layer_parameters = [(4, 8, 1), (4, 8, 2), (4, 8, 3)]
    N, Cin, L = 2, 4, 16

    key = jax.random.PRNGKey(0)
    key, kx = jax.random.split(key)
    x = jax.random.normal(kx, (N, Cin, L), dtype=jnp.float32)

    branch_params = []
    for (cin, cout, k) in layer_parameters:
        key, kw, kb, kg, kbe = jax.random.split(key, 5)
        w = 0.2 * jax.random.normal(kw, (k, cin, cout), dtype=jnp.float32)   # (K, Cin, Cout)
        b = 0.1 * jax.random.normal(kb, (1, cout), dtype=jnp.float32)        # conv bias
        gamma = 1.0 + 0.1 * jax.random.normal(kg, (1, cout), dtype=jnp.float32)
        beta = 0.1 * jax.random.normal(kbe, (1, cout), dtype=jnp.float32)
        branch_params.append((w, b, gamma, beta, k))

    out = jax.block_until_ready(build_layer_forward(x, branch_params))
    ref = _reference_forward(x, branch_params)
    assert out.shape == (N, sum(p[1] for p in layer_parameters), L), out.shape
    assert jnp.allclose(out, ref, atol=1e-4, rtol=1e-4), float(jnp.max(jnp.abs(out - ref)))

    # Second config: forces a multi-step grid, the 2-shard (megacore) stats reduction and the
    # clamped / pl.when-guarded ragged tail step (total_steps = 3 -> 2 shards x 2 steps).
    key, kx2 = jax.random.split(key)
    x2 = jax.random.normal(kx2, (3, Cin, L), dtype=jnp.float32)
    out2 = jax.block_until_ready(build_layer_forward(x2, branch_params, b_tile=1))
    ref2 = _reference_forward(x2, branch_params)
    assert jnp.allclose(out2, ref2, atol=1e-4, rtol=1e-4), float(jnp.max(jnp.abs(out2 - ref2)))

    print("KERNEL_OK")
</pallas_src>

<mosaic_0001>
module attributes {stable_mosaic.version = 11 : i64} {
  func.func @_stats_kernel(%arg0: i32, %arg1: i32, %arg2: memref<2x4x18xf32, #tpu.memory_space<vmem>>, %arg3: memref<24x12xf32, #tpu.memory_space<vmem>>, %arg4: memref<1x24x2xf32, #tpu.memory_space<vmem>>) attributes {dimension_semantics = [#tpu.dimension_semantics<parallel>, #tpu.dimension_semantics<arbitrary>], iteration_bounds = array<i64: 1, 1>, scalar_prefetch = 0 : i64, scratch_operands = 0 : i64, tpu.core_type = #tpu.core_type<tc>, window_params = [{transform_indices = @transform_0, window_bounds = array<i64: 2, 4, 18>}, {pipeline_mode = #tpu.pipeline_mode<synchronous>, transform_indices = @transform_1, window_bounds = array<i64: 24, 12>}, {transform_indices = @transform_2, window_bounds = array<i64: 1, 24, 2>}]} {
    %c0_i32 = arith.constant 0 : i32
    %0 = arith.cmpi eq, %arg1, %c0_i32 : i32
    %1 = arith.extui %0 : i1 to i32
    %c0_i32_0 = arith.constant 0 : i32
    %2 = arith.cmpi ne, %1, %c0_i32_0 : i32
    scf.if %2 {
      %cst = arith.constant 0.000000e+00 : f32
      %8 = vector.broadcast %cst : f32 to vector<1x24x2xf32>
      %c0 = arith.constant 0 : index
      %c0_3 = arith.constant 0 : index
      %c0_4 = arith.constant 0 : index
      %9 = vector.load %arg4[%c0, %c0_3, %c0_4] : memref<1x24x2xf32, #tpu.memory_space<vmem>>, vector<1x24x2xf32>
      tpu.vector_store %arg4[%c0, %c0_3, %c0_4], %8 {strides = array<i32>} : memref<1x24x2xf32, #tpu.memory_space<vmem>>, vector<1x24x2xf32>,
    } else {
    }
    %c1_i32 = arith.constant 1 : i32
    %3 = arith.muli %arg0, %c1_i32 : i32
    %4 = arith.addi %3, %arg1 : i32
    %c1_i32_1 = arith.constant 1 : i32
    %5 = arith.cmpi slt, %4, %c1_i32_1 : i32
    %6 = arith.extui %5 : i1 to i32
    %c0_i32_2 = arith.constant 0 : i32
    %7 = arith.cmpi ne, %6, %c0_i32_2 : i32
    scf.if %7 {
      %cst = arith.constant 0.000000e+00 : f32
      %8 = vector.broadcast %cst : f32 to vector<24x1xf32>
      %cst_3 = arith.constant 0.000000e+00 : f32
      %9 = vector.broadcast %cst_3 : f32 to vector<24x1xf32>
      %c0 = arith.constant 0 : index
      %c0_4 = arith.constant 0 : index
      %c0_5 = arith.constant 0 : index
      %10 = vector.load %arg2[%c0, %c0_4, %c0_5] : memref<2x4x18xf32, #tpu.memory_space<vmem>>, vector<1x4x18xf32>
      %11 = vector.shape_cast %10 : vector<1x4x18xf32> to vector<4x18xf32>
      %12 = vector.extract_strided_slice %11 {offsets = [0, 0], sizes = [4, 16], strides = [1, 1]} : vector<4x18xf32> to vector<4x16xf32>
      %13 = vector.extract_strided_slice %11 {offsets = [0, 1], sizes = [4, 16], strides = [1, 1]} : vector<4x18xf32> to vector<4x16xf32>
      %14 = vector.extract_strided_slice %11 {offsets = [0, 2], sizes = [4, 16], strides = [1, 1]} : vector<4x18xf32> to vector<4x16xf32>
      %15 = tpu.concatenate %12, %13, %14 in 0 : vector<4x16xf32>, vector<4x16xf32>, vector<4x16xf32> -> vector<12x16xf32>
      %c0_6 = arith.constant 0 : index
      %c0_7 = arith.constant 0 : index
      %16 = vector.load %arg3[%c0_6, %c0_7] : memref<24x12xf32, #tpu.memory_space<vmem>>, vector<24x12xf32>
      %cst_8 = arith.constant dense<0.000000e+00> : vector<24x16xf32>
      %17 = tpu.matmul %16, %15, %cst_8 {dimension_numbers = #tpu.dot_dimension_numbers<[1], [0], [0], [1], [0, 0, 1, 1], [], []>} : vector<24x12xf32>, vector<12x16xf32>, vector<24x16xf32> -> vector<24x16xf32>
      %cst_9 = arith.constant dense<0.000000e+00> : vector<24xf32>
      %18 = vector.multi_reduction <add>, %17, %cst_9 [1] : vector<24x16xf32> to vector<24xf32>
      %19 = vector.shape_cast %18 : vector<24xf32> to vector<24x1xf32>
      %20 = arith.addf %8, %19 : vector<24x1xf32>
      %21 = arith.mulf %17, %17 : vector<24x16xf32>
      %cst_10 = arith.constant dense<0.000000e+00> : vector<24xf32>
      %22 = vector.multi_reduction <add>, %21, %cst_10 [1] : vector<24x16xf32> to vector<24xf32>
      %23 = vector.shape_cast %22 : vector<24xf32> to vector<24x1xf32>
      %24 = arith.addf %9, %23 : vector<24x1xf32>
      %c1 = arith.constant 1 : index
      %c0_11 = arith.constant 0 : index
      %c0_12 = arith.constant 0 : index
      %25 = vector.load %arg2[%c1, %c0_11, %c0_12] : memref<2x4x18xf32, #tpu.memory_space<vmem>>, vector<1x4x18xf32>
      %26 = vector.shape_cast %25 : vector<1x4x18xf32> to vector<4x18xf32>
      %27 = vector.extract_strided_slice %26 {offsets = [0, 0], sizes = [4, 16], strides = [1, 1]} : vector<4x18xf32> to vector<4x16xf32>
      %28 = vector.extract_strided_slice %26 {offsets = [0, 1], sizes = [4, 16], strides = [1, 1]} : vector<4x18xf32> to vector<4x16xf32>
      %29 = vector.extract_strided_slice %26 {offsets = [0, 2], sizes = [4, 16], strides = [1, 1]} : vector<4x18xf32> to vector<4x16xf32>
      %30 = tpu.concatenate %27, %28, %29 in 0 : vector<4x16xf32>, vector<4x16xf32>, vector<4x16xf32> -> vector<12x16xf32>
      %c0_13 = arith.constant 0 : index
      %c0_14 = arith.constant 0 : index
      %31 = vector.load %arg3[%c0_13, %c0_14] : memref<24x12xf32, #tpu.memory_space<vmem>>, vector<24x12xf32>
      %cst_15 = arith.constant dense<0.000000e+00> : vector<24x16xf32>
      %32 = tpu.matmul %31, %30, %cst_15 {dimension_numbers = #tpu.dot_dimension_numbers<[1], [0], [0], [1], [0, 0, 1, 1], [], []>} : vector<24x12xf32>, vector<12x16xf32>, vector<24x16xf32> -> vector<24x16xf32>
      %cst_16 = arith.constant dense<0.000000e+00> : vector<24xf32>
      %33 = vector.multi_reduction <add>, %32, %cst_16 [1] : vector<24x16xf32> to vector<24xf32>
      %34 = vector.shape_cast %33 : vector<24xf32> to vector<24x1xf32>
      %35 = arith.addf %20, %34 : vector<24x1xf32>
      %36 = arith.mulf %32, %32 : vector<24x16xf32>
      %cst_17 = arith.constant dense<0.000000e+00> : vector<24xf32>
      %37 = vector.multi_reduction <add>, %36, %cst_17 [1] : vector<24x16xf32> to vector<24xf32>
      %38 = vector.shape_cast %37 : vector<24xf32> to vector<24x1xf32>
      %39 = arith.addf %24, %38 : vector<24x1xf32>
      %c0_18 = arith.constant 0 : index
      %c0_19 = arith.constant 0 : index
      %c0_20 = arith.constant 0 : index
      %40 = vector.load %arg4[%c0_18, %c0_19, %c0_20] : memref<1x24x2xf32, #tpu.memory_space<vmem>>, vector<1x24x2xf32>
      %41 = vector.shape_cast %40 : vector<1x24x2xf32> to vector<24x2xf32>
      %42 = tpu.concatenate %35, %39 in 1 : vector<24x1xf32>, vector<24x1xf32> -> vector<24x2xf32>
      %43 = arith.addf %41, %42 : vector<24x2xf32>
      %c0_21 = arith.constant 0 : index
      %c0_22 = arith.constant 0 : index
      %c0_23 = arith.constant 0 : index
      %44 = vector.load %arg4[%c0_21, %c0_22, %c0_23] : memref<1x24x2xf32, #tpu.memory_space<vmem>>, vector<1x24x2xf32>
      %45 = vector.shape_cast %44 : vector<1x24x2xf32> to vector<24x2xf32>
      %46 = vector.shape_cast %43 : vector<24x2xf32> to vector<1x24x2xf32>
      tpu.vector_store %arg4[%c0_21, %c0_22, %c0_23], %46 {strides = array<i32>} : memref<1x24x2xf32, #tpu.memory_space<vmem>>, vector<1x24x2xf32>,
    } else {
    }
    return
  }
  func.func @transform_0(%arg0: i32, %arg1: i32) -> (i32, i32, i32) {
    %c1_i32 = arith.constant 1 : i32
    %0 = arith.muli %arg0, %c1_i32 : i32
    %1 = arith.addi %0, %arg1 : i32
    %c0_i32 = arith.constant 0 : i32
    %2 = arith.minsi %1, %c0_i32 : i32
    %c0_i32_0 = arith.constant 0 : i32
    %c0_i32_1 = arith.constant 0 : i32
    %c0_i32_2 = arith.constant 0 : i32
    return %2, %c0_i32_0, %c0_i32_1 : i32, i32, i32
  }
  func.func @transform_1(%arg0: i32, %arg1: i32) -> (i32, i32) {
    %c0_i32 = arith.constant 0 : i32
    %c0_i32_0 = arith.constant 0 : i32
    %c0_i32_1 = arith.constant 0 : i32
    return %c0_i32, %c0_i32_0 : i32, i32
  }
  func.func @transform_2(%arg0: i32, %arg1: i32) -> (i32, i32, i32) {
    %c0_i32 = arith.constant 0 : i32
    %c0_i32_0 = arith.constant 0 : i32
    %c0_i32_1 = arith.constant 0 : i32
    return %arg0, %c0_i32, %c0_i32_0 : i32, i32, i32
  }
}

</mosaic_0001>

<bundles_post_ra>
// kernel: tpu_custom_call.1
= control target key start
LH: loop header
LB: loop body
LE: loop exit
PB: predicated region body
PF: predicated region fallthrough
CT: control target
= control target key end

     0   :  { %v401_v2 = vmov 0.0|0.0   ;;  %vm402_vm0 = vmmov 0   ;;  %v403_v5 = vmov 0.0   ;;  %s404_s13 = smov 127   ;;  %s405_s14 = smov 126   ;;  %vm64_vm1 = vcmask 1043456   ;;  %s500_s0 = inlined_call_operand.vmem [shape: f32[2,4,18], index: 0, kind: input, shape index: {}]   ;;  %s501_s1 = inlined_call_operand.vmem [shape: f32[24,12], index: 1, kind: input, shape index: {}]   ;;  %s502_s2 = inlined_call_operand.vmem [shape: f32[1,24,2], index: 2, kind: output, shape index: {}]  }
   0x1   :  { %v56_v0 = vld [vmem:[%s500_s0] sm:$0xf]  ;;  %v336_v1 = vld [vmem:[%s500_s0 + $0x4] sm:$0xf]  ;;  %377 = vmatprep.subr.bf16.mxu0 %v401_v2  ;;  %381 = vmatprep.subr.bf16.mxu1 %v401_v2  ;;  %vm406_vm2 = vmmov 1   ;;  %vm69_vm4 = vcmask 97280  }
   0x2   :  { %v58_v3 = vrot.slane %v56_v0, 4  ;;  %v192_v4 = vrot.slane %v336_v1, 4  ;;  %355 = vmatprep.mubr.msk.f32.mxu0 %vm402_vm0, %v403_v5  ;;  %368 = vmatprep.mubr.msk.f32.mxu1 %vm402_vm0, %v403_v5  ;;  %v396_v7 = vpack.i.bf16 %v336_v1, %v56_v0  ;;  %vm379_vm3 = vmpackc.low %vm64_vm1, %vm406_vm2  ;;  %v66_v18 = vld [vmem:[%s501_s1] sm:$0xff]  ;;  %v67_v19 = vld [vmem:[%s501_s1 + $0x8] sm:$0xff]  ;;  %vm161_vm5 = vcmask 130048  }
   0x3   :  { %v68_v20 = vld [vmem:[%s501_s1 + $0x10] sm:$0xff]  ;;  %vm47_vm6 = vcmask 15360   ;;  %vm311_vm7 = vcmask 7168  }
   0x4   :  { %v391_v6 = vpack.i.bf16 %v192_v4, %v58_v3  ;;  %48 = vst.msk [vmem:[%s502_s2] sm:$0xff] %vm47_vm6, %v403_v5  ;;  %49 = vst.msk [vmem:[%s502_s2 + $0x8] sm:$0xff] %vm47_vm6, %v403_v5 }
   0x5   :  { %50 = vst.msk [vmem:[%s502_s2 + $0x10] sm:$0xff] %vm47_vm6, %v403_v5 }
   0x6   :  { %392 = vrot.lane.b32.xlu0 %v391_v6, %s404_s13 }
   0xa   :  { %397 = vrot.lane.b32.xlu0 %v396_v7, %s405_s14 }
   0xb   :  { %v308_v56 = vld [vmem:[%s502_s2] sm:$0xff] }
   0xc   :  { %v310_v4 = vld [vmem:[%s502_s2 + $0x10] sm:$0xff] }
  0x78   :  { %v393_v8 = vpop.permute.xlu0 %392 }
  0x79   :  { %v395_v9 = vunpack.i.h.bf16 %v393_v8  ;;  %v394_v10 = vunpack.i.l.bf16 %v393_v8 }
  0x7b   :  { %v65_v14 = vsel %vm64_vm1, %v56_v0, %v394_v10  ;;  %v198_v15 = vsel %vm64_vm1, %v336_v1, %v395_v9  ;;  %v309_v10 = vld [vmem:[%s502_s2 + $0x8] sm:$0xff] }
  0x7c   :  { %v398_v11 = vpop.permute.xlu0 %397 }
  0x7d   :  { %v400_v12 = vunpack.i.h.bf16 %v398_v11  ;;  %v399_v13 = vunpack.i.l.bf16 %v398_v11 }
  0x7f   :  { %v378_v16 = vpack.c.bf16 %v399_v13, %v65_v14  ;;  %v382_v17 = vpack.c.bf16 %v400_v12, %v198_v15 }
  0x81   :  { %380 = vmatpush3.bf16.msk.msra.mxu0 %vm379_vm3, %v378_v16  ;;  %384 = vmatpush3.bf16.msk.msra.mxu1 %vm379_vm3, %v382_v17 }
  0x84   :  { %356 = vmatmul.mubr.msk.f32.vlgmr.msra.gmra.mrb[0].mxu0 %vm69_vm4, %v66_v18  ;;  %369 = vmatmul.mubr.msk.f32.vlgmr.msra.gmra.mrb[0].mxu1 %vm69_vm4, %v66_v18 }
  0x85   :  { %358 = vmatprep.mubr.msk.f32.mxu0 %vm402_vm0, %v403_v5  ;;  %371 = vmatprep.mubr.msk.f32.mxu1 %vm402_vm0, %v403_v5 }
  0x88   :  { %359 = vmatmul.mubr.msk.f32.gmra.mrb[2].mxu0 %vm69_vm4, %v67_v19  ;;  %372 = vmatmul.mubr.msk.f32.gmra.mrb[2].mxu1 %vm69_vm4, %v67_v19 }
  0x89   :  { %361 = vmatprep.mubr.msk.f32.mxu0 %vm402_vm0, %v403_v5  ;;  %374 = vmatprep.mubr.msk.f32.mxu1 %vm402_vm0, %v403_v5 }
  0x8c   :  { %362 = vmatmul.mubr.msk.f32.gmra.mrb[4].mxu0 %vm69_vm4, %v68_v20  ;;  %375 = vmatmul.mubr.msk.f32.gmra.mrb[4].mxu1 %vm69_vm4, %v68_v20 }
 0x157   :  { %v147_v21 = vpop.f32.mrb[0].mxu0  ;;  %v267_v22 = vpop.f32.mrb[0].mxu1 }
 0x158   :  { %v357_v23 = vpop.f32.mrb[1].mxu0  ;;  %v162_v24 = vsel %vm161_vm5, %v147_v21, 0.0  ;;  %v370_v25 = vpop.f32.mrb[1].mxu1  ;;  %v281_v26 = vsel %vm161_vm5, %v267_v22, 0.0  ;;  %v174_v29 = vmul.f32 %v147_v21, %v147_v21  ;;  %v293_v34 = vmul.f32 %v267_v22, %v267_v22 }
 0x159   :  { %163 = vadd.xlane.f32.xlu1 %v162_v24 }
 0x15a   :  { %v177_v35 = vsel %vm161_vm5, %v174_v29, 0.0  ;;  %v296_v41 = vsel %vm161_vm5, %v293_v34, 0.0 }
 0x15b   :  { %v152_v27 = vpop.f32.mrb[2].mxu0  ;;  %v272_v28 = vpop.f32.mrb[2].mxu1 }
 0x15c   :  { %v360_v30 = vpop.f32.mrb[3].mxu0  ;;  %v373_v31 = vpop.f32.mrb[3].mxu1  ;;  %v165_v42 = vsel %vm161_vm5, %v152_v27, 0.0  ;;  %v284_v43 = vsel %vm161_vm5, %v272_v28, 0.0  ;;  %v175_v44 = vmul.f32 %v152_v27, %v152_v27  ;;  %v294_v49 = vmul.f32 %v272_v28, %v272_v28 }
 0x15d   :  { %282 = vadd.xlane.f32.xlu1 %v281_v26 }
 0x15e   :  { %v180_v45 = vsel %vm161_vm5, %v175_v44, 0.0  ;;  %v299_v50 = vsel %vm161_vm5, %v294_v49, 0.0 }
 0x15f   :  { %v157_v32 = vpop.f32.mrb[4].mxu0  ;;  %v277_v33 = vpop.f32.mrb[4].mxu1 }
 0x160   :  { %v295_v36 = vmul.f32 %v277_v33, %v277_v33  ;;  %v376_v37 = vpop.f32.mrb[5].mxu1  ;;  %v168_v38 = vsel %vm161_vm5, %v157_v32, 0.0  ;;  %v363_v39 = vpop.f32.mrb[5].mxu0  ;;  %v176_v46 = vmul.f32 %v157_v32, %v157_v32  ;;  %v287_v47 = vsel %vm161_vm5, %v277_v33, 0.0 }
 0x161   :  { %178 = vadd.xlane.f32.xlu1 %v177_v35  ;;  %169 = vadd.xlane.f32.xlu0 %v168_v38 }
 0x162   :  { %v302_v40 = vsel %vm161_vm5, %v295_v36, 0.0  ;;  %v183_v48 = vsel %vm161_vm5, %v176_v46, 0.0 }
 0x165   :  { %297 = vadd.xlane.f32.xlu1 %v296_v41  ;;  %303 = vadd.xlane.f32.xlu0 %v302_v40 }
 0x169   :  { %166 = vadd.xlane.f32.xlu1 %v165_v42 }
 0x16d   :  { %285 = vadd.xlane.f32.xlu1 %v284_v43 }
 0x171   :  { %181 = vadd.xlane.f32.xlu1 %v180_v45 }
 0x175   :  { %288 = vadd.xlane.f32.xlu1 %v287_v47 }
 0x179   :  { %184 = vadd.xlane.f32.xlu1 %v183_v48 }
 0x17d   :  { %300 = vadd.xlane.f32.xlu1 %v299_v50 }
 0x1e6   :  { %v164_v51 = vpop.xlane.xlu1 %163 }
 0x1ea   :  { %v283_v52 = vpop.xlane.xlu1 %282 }
 0x1eb   :  { %v290_v55 = vadd.f32 %v283_v52, %v164_v51 }
 0x1ee   :  { %v179_v53 = vpop.xlane.xlu1 %178  ;;  %v170_v63 = vpop.xlane.xlu0 %169 }
 0x1f2   :  { %v298_v54 = vpop.xlane.xlu1 %297  ;;  %v304_v1 = vpop.xlane.xlu0 %303 }
 0x1f3   :  { %v305_v57 = vadd.f32 %v298_v54, %v179_v53 }
 0x1f5   :  { %v312_v58 = vsel %vm311_vm7, %v290_v55, %v305_v57 }
 0x1f6   :  { %v315_v59 = vadd.f32 %v312_v58, %v308_v56  ;;  %v167_v60 = vpop.xlane.xlu1 %166 }
 0x1f8   :  { %319 = vst.msk [vmem:[%s502_s2] sm:$0xff] %vm47_vm6, %v315_v59 }
 0x1fa   :  { %v286_v61 = vpop.xlane.xlu1 %285 }
 0x1fb   :  { %v291_v9 = vadd.f32 %v286_v61, %v167_v60 }
 0x1fe   :  { %v182_v62 = vpop.xlane.xlu1 %181 }
 0x202   :  { %v289_v0 = vpop.xlane.xlu1 %288 }
 0x203   :  { %v292_v3 = vadd.f32 %v289_v0, %v170_v63 }
 0x206   :  { %v185_v2 = vpop.xlane.xlu1 %184 }
 0x207   :  { %v307_v5 = vadd.f32 %v304_v1, %v185_v2 }
 0x209   :  { %v314_v6 = vsel %vm311_vm7, %v292_v3, %v307_v5 }
 0x20a   :  { %v317_v7 = vadd.f32 %v314_v6, %v310_v4  ;;  %v301_v8 = vpop.xlane.xlu1 %300 }
 0x20b   :  { %v306_v11 = vadd.f32 %v301_v8, %v182_v62 }
 0x20c   :  { %321 = vst.msk [vmem:[%s502_s2 + $0x10] sm:$0xff] %vm47_vm6, %v317_v7 }
 0x20d   :  { %v313_v12 = vsel %vm311_vm7, %v291_v9, %v306_v11 }
 0x20e   :  { %v316_v13 = vadd.f32 %v313_v12, %v309_v10 }
 0x210   :  { %320 = vst.msk [vmem:[%s502_s2 + $0x8] sm:$0xff] %vm47_vm6, %v316_v13 }

</bundles_post_ra>
